<compile_context>
chip_gen: v7x
topology: tpu7x:2x2x1
jax: 0.10.0
libtpu: 0.0.40
codegen_flags: <defaults>
</compile_context>

<pallas_src>
import functools

import jax
import jax.numpy as jnp
from jax import lax
from jax.experimental import pallas as pl
from jax.experimental.pallas import tpu as pltpu

BN_EPS = 1e-5
LANE = 128


def _round_up(n, m):
    return (n + m - 1) // m * m


def _round_down(n, m):
    return max((n // m) * m, 0)


# --------------------------------------------------------------------------
# Fast path: whole (padded) batch in a single tile -> one grid step, exact
# two-pass BatchNorm statistics (matches the PyTorch formulation).
# --------------------------------------------------------------------------
def _single_tile_kernel(x_ref, w_ref, lvmask_ref, gamma_ref, beta_ref, out_ref,
                        *, batch, padded_batch):
    # One MXU pass over the fused [Wmu | Wlv | pad] slab.  The linear bias is
    # omitted: training-mode BatchNorm subtracts the batch mean, so any
    # per-column constant offset cancels exactly.
    zw = jnp.dot(x_ref[...], w_ref[...], preferred_element_type=jnp.float32)

    n_pad = padded_batch - batch
    inv_n = 1.0 / float(batch)

    # Zero-padded batch rows have zw == 0, so they drop out of the column sum
    # and contribute exactly n_pad * mean^2 to sum((z - mean)^2).
    mean = jnp.sum(zw, axis=0, keepdims=True) * inv_n
    c = zw - mean
    ssq = jnp.sum(c * c, axis=0, keepdims=True)
    if n_pad:
        ssq = ssq - float(n_pad) * (mean * mean)
    var = jnp.maximum(ssq * inv_n, 0.0)

    scale = gamma_ref[...] * lax.rsqrt(var + BN_EPS)
    y = c * scale + beta_ref[...]
    # mu columns pass through; lv columns become sigma = exp(0.5 * lv).
    out_ref[...] = jnp.where(lvmask_ref[...] > 0.0, jnp.exp(0.5 * y), y)


# --------------------------------------------------------------------------
# Streaming path: two-phase BatchNorm over batch tiles.
#   phase 0: matmul once per tile, cache z in VMEM, accumulate shifted sums.
#   phase 1: fold stats into a per-column (scale, shift), single VPU pass.
# --------------------------------------------------------------------------
def _streaming_kernel(x_ref, w_ref, lvmask_ref, gamma_ref, beta_ref, out_ref,
                      zc_ref, sum_ref, ssq_ref, shift0_ref, scale_ref,
                      shift_ref, *, batch, padded_batch, block_rows,
                      use_zcache):
    phase = pl.program_id(0)   # 0: matmul + stats, 1: normalize + write
    tile = pl.program_id(1)

    # ---------------- phase 0: matmul once, cache z, accumulate statistics.
    @pl.when(phase == 0)
    def _stats():
        zw = jnp.dot(x_ref[...], w_ref[...], preferred_element_type=jnp.float32)
        if use_zcache:
            zc_ref[tile] = zw                       # VMEM-resident z cache

        @pl.when(tile == 0)
        def _init():
            # Shifted sums: subtract tile 0's column mean before accumulating
            # to avoid catastrophic cancellation of E[z^2] - E[z]^2 in f32.
            shift0_ref[...] = (jnp.sum(zw, axis=0, keepdims=True)
                               * (1.0 / float(block_rows)))
            sum_ref[...] = jnp.zeros_like(sum_ref)
            ssq_ref[...] = jnp.zeros_like(ssq_ref)

        d = zw - shift0_ref[...]
        sum_ref[...] += jnp.sum(d, axis=0, keepdims=True)
        ssq_ref[...] += jnp.sum(d * d, axis=0, keepdims=True)
        # Defensive: keep the (never-flushed-in-phase-0) output buffer defined.
        out_ref[...] = zw

    # -------- finalize: fold mean / rsqrt / gamma / beta into scale & shift.
    @pl.when((phase == 1) & (tile == 0))
    def _finalize():
        n_pad = padded_batch - batch
        s = sum_ref[...]
        q = ssq_ref[...]
        if n_pad:
            # Padded rows (last tile only) have zw == 0, i.e. d == -shift0;
            # remove their contribution analytically (no per-tile masking).
            sh0 = shift0_ref[...]
            s = s + float(n_pad) * sh0
            q = q - float(n_pad) * (sh0 * sh0)
        inv_n = 1.0 / float(batch)
        dmean = s * inv_n
        mean = dmean + shift0_ref[...]
        var = jnp.maximum(q * inv_n - dmean * dmean, 0.0)
        sc = gamma_ref[...] * lax.rsqrt(var + BN_EPS)
        scale_ref[...] = sc
        shift_ref[...] = beta_ref[...] - mean * sc

    # ---------------- phase 1: pure VPU/EUP pass per tile (no recompute when
    #                  the z cache fits VMEM).
    @pl.when(phase == 1)
    def _apply():
        if use_zcache:
            zw = zc_ref[tile]
        else:
            zw = jnp.dot(x_ref[...], w_ref[...],
                         preferred_element_type=jnp.float32)
        y = zw * scale_ref[...] + shift_ref[...]
        out_ref[...] = jnp.where(lvmask_ref[...] > 0.0, jnp.exp(0.5 * y), y)


def hidden_to_lognormal(hidden, params, *, block_rows=1024,
                        vmem_budget_bytes=40 * 1024 * 1024,
                        max_zcache_bytes=None):
    """Returns (mu, sigma): the parameters of LogNormal(mu, sigma)."""
    B, H = hidden.shape
    T = params["wmu"].shape[1]

    # Fuse the mu / lv heads into one lane-dense slab, padded to a 128-lane
    # multiple so output stores are full-lane (no masked partial vst).
    Np = _round_up(max(2 * T, LANE), LANE)

    def fuse_pad(a_mu, a_lv, pad_value=0.0):
        fused = jnp.concatenate([a_mu, a_lv], axis=-1)
        pad = Np - 2 * T
        if pad:
            pads = [(0, 0)] * (fused.ndim - 1) + [(0, pad)]
            fused = jnp.pad(fused, pads, constant_values=pad_value)
        return fused

    w = fuse_pad(params["wmu"], params["wlv"]).astype(jnp.float32)
    gamma = fuse_pad(params["bn_mu_gamma"], params["bn_lv_gamma"], 1.0)
    beta = fuse_pad(params["bn_mu_beta"], params["bn_lv_beta"])
    # NOTE: bmu / blv are mathematically cancelled by training-mode BatchNorm
    # (batch-mean subtraction removes per-column constants) -> not passed in.

    # Precomputed lv-column selector (replaces a per-tile iota + compare).
    col = jnp.arange(Np, dtype=jnp.int32)
    lv_mask = ((col >= T) & (col < 2 * T)).astype(jnp.float32)[None, :]

    # ---------------------------------------------------------------- tiling
    # Largest batch tile that keeps all live buffers inside one conservative
    # VMEM budget (safe on v7x's 64 MiB physical); vmem_limit_bytes is set
    # explicitly so v5e's small default scoped limit does not bite.
    f32 = 4
    fixed_bytes = H * Np * f32 + 16 * Np * f32     # weights (1-buf) + rows
    per_row_bytes = (2 * H + 2 * Np) * f32         # x + out, double-buffered
    tb_cap = max((vmem_budget_bytes - fixed_bytes) // per_row_bytes, 8)
    tb = int(min(block_rows, _round_up(B, 8), _round_down(tb_cap, 8)))
    tb = max(tb, 8)
    b_pad = _round_up(B, tb)
    n_tiles = b_pad // tb

    if b_pad != B:
        hidden = jnp.pad(hidden, ((0, b_pad - B), (0, 0)))
    hidden = hidden.astype(jnp.float32)
    # TODO(synk): a bf16 x/W fast path (halves the dominant HBM stream) is
    #             possible but not enabled to preserve f32 numerics.

    base_bytes = fixed_bytes + per_row_bytes * tb

    def const_spec(shape, index_map):
        # Constant-index inputs: one buffer is enough (saves VMEM).
        return pl.BlockSpec(shape, index_map, pipeline_mode=pl.Buffered(1))

    if n_tiles == 1:
        # ---------------- fast path: one grid step, no phase machinery.
        vmem_limit = int(base_bytes + (16 << 20))
        kernel = functools.partial(_single_tile_kernel,
                                   batch=B, padded_batch=b_pad)
        out = pl.pallas_call(
            kernel,
            out_shape=jax.ShapeDtypeStruct((b_pad, Np), jnp.float32),
            grid_spec=pltpu.PrefetchScalarGridSpec(
                num_scalar_prefetch=0,
                grid=(1,),
                in_specs=[
                    const_spec((tb, H), lambda i: (0, 0)),
                    const_spec((H, Np), lambda i: (0, 0)),
                    const_spec((1, Np), lambda i: (0, 0)),
                    const_spec((1, Np), lambda i: (0, 0)),
                    const_spec((1, Np), lambda i: (0, 0)),
                ],
                out_specs=pl.BlockSpec((tb, Np), lambda i: (0, 0)),
            ),
            compiler_params=pltpu.CompilerParams(
                dimension_semantics=("arbitrary",),
                vmem_limit_bytes=vmem_limit,
            ),
        )(hidden, w, lv_mask, gamma, beta)
    else:
        # ---------------- streaming path: two-phase BatchNorm over tiles.
        zc_bytes = n_tiles * tb * Np * f32
        zc_budget = (vmem_budget_bytes - base_bytes
                     if max_zcache_bytes is None else max_zcache_bytes)
        use_zcache = zc_bytes <= max(zc_budget, 0)
        zc_shape = (n_tiles, tb, Np) if use_zcache else (1, 8, LANE)
        vmem_limit = int(base_bytes + (zc_bytes if use_zcache else 4096)
                         + (16 << 20))

        kernel = functools.partial(_streaming_kernel, batch=B,
                                   padded_batch=b_pad, block_rows=tb,
                                   use_zcache=use_zcache)

        if use_zcache:
            # Phase 1 reads z from the VMEM cache: pin x's block index so the
            # (B, H) hidden stream is fetched from HBM only once.
            x_map = lambda p, i: (i * (1 - p), 0)
        else:
            x_map = lambda p, i: (i, 0)

        out = pl.pallas_call(
            kernel,
            out_shape=jax.ShapeDtypeStruct((b_pad, Np), jnp.float32),
            grid_spec=pltpu.PrefetchScalarGridSpec(
                num_scalar_prefetch=0,
                grid=(2, n_tiles),        # (phase, batch tile)
                in_specs=[
                    pl.BlockSpec((tb, H), x_map),
                    const_spec((H, Np), lambda p, i: (0, 0)),
                    const_spec((1, Np), lambda p, i: (0, 0)),
                    const_spec((1, Np), lambda p, i: (0, 0)),
                    const_spec((1, Np), lambda p, i: (0, 0)),
                ],
                # Phase 0: every step maps to output block 0 (written but never
                # flushed, since the index never changes).  Phase 1 writes
                # block i; each block is flushed once with final data.
                out_specs=pl.BlockSpec((tb, Np), lambda p, i: (i * p, 0)),
                scratch_shapes=[
                    pltpu.VMEM(zc_shape, jnp.float32),  # z cache
                    pltpu.VMEM((1, Np), jnp.float32),   # sum of (z - shift0)
                    pltpu.VMEM((1, Np), jnp.float32),   # sum of squares
                    pltpu.VMEM((1, Np), jnp.float32),   # shift0 (tile-0 mean)
                    pltpu.VMEM((1, Np), jnp.float32),   # folded BN scale
                    pltpu.VMEM((1, Np), jnp.float32),   # folded BN shift
                ],
            ),
            compiler_params=pltpu.CompilerParams(
                # Cross-tile stat accumulation makes both axes sequential.
                dimension_semantics=("arbitrary", "arbitrary"),
                vmem_limit_bytes=vmem_limit,
            ),
        )(hidden, w, lv_mask, gamma, beta)

    mu = out[:B, :T]
    sigma = out[:B, T:2 * T]
    return mu, sigma


def init_params(key, hidden_size, num_topics):
    """Synthetic init mirroring the nn.Module parameter shapes.

    nn.Linear weight is (out, in) in PyTorch; stored here pre-transposed to
    (in, out). BatchNorm1d default init: gamma=1, beta=0.
    """
    k1, k2, k3, k4 = jax.random.split(key, 4)

    def lin(kw, kb, fan_in, fan_out):
        bound = 1.0 / jnp.sqrt(fan_in)
        wt = jax.random.uniform(kw, (fan_in, fan_out), jnp.float32, -bound, bound)
        bs = jax.random.uniform(kb, (1, fan_out), jnp.float32, -bound, bound)
        return wt, bs

    wmu, bmu = lin(k1, k2, hidden_size, num_topics)
    wlv, blv = lin(k3, k4, hidden_size, num_topics)
    return {
        "wmu": wmu, "bmu": bmu,
        "wlv": wlv, "blv": blv,
        "bn_mu_gamma": jnp.ones((1, num_topics), jnp.float32),
        "bn_mu_beta": jnp.zeros((1, num_topics), jnp.float32),
        "bn_lv_gamma": jnp.ones((1, num_topics), jnp.float32),
        "bn_lv_beta": jnp.zeros((1, num_topics), jnp.float32),
    }


def _reference(hidden, p):
    def head(w, b, g, bt):
        z = hidden @ w + b
        m = jnp.mean(z, axis=0, keepdims=True)
        v = jnp.mean((z - m) ** 2, axis=0, keepdims=True)
        return (z - m) / jnp.sqrt(v + BN_EPS) * g + bt

    mu = head(p["wmu"], p["bmu"], p["bn_mu_gamma"], p["bn_mu_beta"])
    lv = head(p["wlv"], p["blv"], p["bn_lv_gamma"], p["bn_lv_beta"])
    return mu, jnp.exp(0.5 * lv)


if __name__ == "__main__":
    root_key = jax.random.PRNGKey(0)

    def check(batch, hidden_size, num_topics, **kw):
        kk = jax.random.fold_in(root_key, batch * 1000 + hidden_size + num_topics)
        kx, kp = jax.random.split(kk)
        hidden = jax.random.normal(kx, (batch, hidden_size), jnp.float32)
        params = init_params(kp, hidden_size, num_topics)

        mu, sigma = hidden_to_lognormal(hidden, params, **kw)
        mu, sigma = jax.block_until_ready((mu, sigma))

        mu_ref, sigma_ref = _reference(hidden, params)
        assert mu.shape == (batch, num_topics)
        assert sigma.shape == (batch, num_topics)
        assert jnp.allclose(mu, mu_ref, atol=1e-4, rtol=1e-4), float(
            jnp.max(jnp.abs(mu - mu_ref)))
        assert jnp.allclose(sigma, sigma_ref, atol=1e-4, rtol=1e-4), float(
            jnp.max(jnp.abs(sigma - sigma_ref)))
        assert bool(jnp.all(sigma > 0))

    # Fast path (single tile), no batch padding.
    check(8, 64, 16)
    # Fast path with zero-padded batch rows (analytic correction).
    check(6, 32, 8)
    # Streaming two-phase path with VMEM-resident z cache.
    check(200, 64, 16, block_rows=64)
    # Streaming fallback without the z cache (matmul recomputed in phase 1).
    check(200, 64, 16, block_rows=64, max_zcache_bytes=0)

    print("KERNEL_OK")
</pallas_src>

<mosaic_0001>
module attributes {stable_mosaic.version = 11 : i64} {
  func.func @_single_tile_kernel(%arg0: i32, %arg1: memref<8x64xf32, #tpu.memory_space<vmem>>, %arg2: memref<64x128xf32, #tpu.memory_space<vmem>>, %arg3: memref<1x128xf32, #tpu.memory_space<vmem>>, %arg4: memref<1x128xf32, #tpu.memory_space<vmem>>, %arg5: memref<1x128xf32, #tpu.memory_space<vmem>>, %arg6: memref<8x128xf32, #tpu.memory_space<vmem>>) attributes {dimension_semantics = [#tpu.dimension_semantics<arbitrary>], iteration_bounds = array<i64: 1>, scalar_prefetch = 0 : i64, scratch_operands = 0 : i64, tpu.core_type = #tpu.core_type<tc>, window_params = [{pipeline_mode = #tpu.pipeline_mode<synchronous>, transform_indices = @transform_0, window_bounds = array<i64: 8, 64>}, {pipeline_mode = #tpu.pipeline_mode<synchronous>, transform_indices = @transform_1, window_bounds = array<i64: 64, 128>}, {pipeline_mode = #tpu.pipeline_mode<synchronous>, transform_indices = @transform_2, window_bounds = array<i64: 1, 128>}, {pipeline_mode = #tpu.pipeline_mode<synchronous>, transform_indices = @transform_3, window_bounds = array<i64: 1, 128>}, {pipeline_mode = #tpu.pipeline_mode<synchronous>, transform_indices = @transform_4, window_bounds = array<i64: 1, 128>}, {pipeline_mode = #tpu.pipeline_mode<synchronous>, transform_indices = @transform_5, window_bounds = array<i64: 8, 128>}]} {
    %c0 = arith.constant 0 : index
    %c0_0 = arith.constant 0 : index
    %0 = vector.load %arg1[%c0, %c0_0] : memref<8x64xf32, #tpu.memory_space<vmem>>, vector<8x64xf32>
    %c0_1 = arith.constant 0 : index
    %c0_2 = arith.constant 0 : index
    %1 = vector.load %arg2[%c0_1, %c0_2] : memref<64x128xf32, #tpu.memory_space<vmem>>, vector<64x128xf32>
    %cst = arith.constant dense<0.000000e+00> : vector<8x128xf32>
    %2 = tpu.matmul %0, %1, %cst {dimension_numbers = #tpu.dot_dimension_numbers<[1], [0], [0], [1], [0, 0, 1, 1], [], []>} : vector<8x64xf32>, vector<64x128xf32>, vector<8x128xf32> -> vector<8x128xf32>
    %cst_3 = arith.constant dense<0.000000e+00> : vector<128xf32>
    %3 = vector.multi_reduction <add>, %2, %cst_3 [0] : vector<8x128xf32> to vector<128xf32>
    %4 = vector.shape_cast %3 : vector<128xf32> to vector<1x128xf32>
    %cst_4 = arith.constant 1.250000e-01 : f32
    %5 = vector.broadcast %cst_4 : f32 to vector<1x128xf32>
    %6 = arith.mulf %4, %5 : vector<1x128xf32>
    %7 = vector.broadcast %6 : vector<1x128xf32> to vector<8x128xf32>
    %8 = arith.subf %2, %7 : vector<8x128xf32>
    %9 = arith.mulf %8, %8 : vector<8x128xf32>
    %cst_5 = arith.constant dense<0.000000e+00> : vector<128xf32>
    %10 = vector.multi_reduction <add>, %9, %cst_5 [0] : vector<8x128xf32> to vector<128xf32>
    %11 = vector.shape_cast %10 : vector<128xf32> to vector<1x128xf32>
    %cst_6 = arith.constant 1.250000e-01 : f32
    %12 = vector.broadcast %cst_6 : f32 to vector<1x128xf32>
    %13 = arith.mulf %11, %12 : vector<1x128xf32>
    %cst_7 = arith.constant 0.000000e+00 : f32
    %14 = vector.broadcast %cst_7 : f32 to vector<1x128xf32>
    %15 = arith.maximumf %13, %14 : vector<1x128xf32>
    %c0_8 = arith.constant 0 : index
    %c0_9 = arith.constant 0 : index
    %16 = vector.load %arg4[%c0_8, %c0_9] : memref<1x128xf32, #tpu.memory_space<vmem>>, vector<1x128xf32>
    %cst_10 = arith.constant 9.99999974E-6 : f32
    %17 = vector.broadcast %cst_10 : f32 to vector<1x128xf32>
    %18 = arith.addf %15, %17 : vector<1x128xf32>
    %19 = math.rsqrt %18 : vector<1x128xf32>
    %20 = arith.mulf %16, %19 : vector<1x128xf32>
    %21 = vector.broadcast %20 : vector<1x128xf32> to vector<8x128xf32>
    %22 = arith.mulf %8, %21 : vector<8x128xf32>
    %c0_11 = arith.constant 0 : index
    %c0_12 = arith.constant 0 : index
    %23 = vector.load %arg5[%c0_11, %c0_12] : memref<1x128xf32, #tpu.memory_space<vmem>>, vector<1x128xf32>
    %24 = vector.broadcast %23 : vector<1x128xf32> to vector<8x128xf32>
    %25 = arith.addf %22, %24 : vector<8x128xf32>
    %c0_13 = arith.constant 0 : index
    %c0_14 = arith.constant 0 : index
    %26 = vector.load %arg3[%c0_13, %c0_14] : memref<1x128xf32, #tpu.memory_space<vmem>>, vector<1x128xf32>
    %cst_15 = arith.constant 0.000000e+00 : f32
    %27 = vector.broadcast %cst_15 : f32 to vector<1x128xf32>
    %28 = arith.cmpf ogt, %26, %27 : vector<1x128xf32>
    %cst_16 = arith.constant 5.000000e-01 : f32
    %29 = vector.broadcast %cst_16 : f32 to vector<8x128xf32>
    %30 = arith.mulf %29, %25 : vector<8x128xf32>
    %31 = math.exp %30 : vector<8x128xf32>
    %32 = vector.shape_cast %28 : vector<1x128xi1> to vector<1x128xi1>
    %33 = vector.broadcast %32 : vector<1x128xi1> to vector<8x128xi1>
    %34 = arith.select %33, %31, %25 : vector<8x128xi1>, vector<8x128xf32>
    %c0_17 = arith.constant 0 : index
    %c0_18 = arith.constant 0 : index
    %35 = vector.load %arg6[%c0_17, %c0_18] : memref<8x128xf32, #tpu.memory_space<vmem>>, vector<8x128xf32>
    tpu.vector_store %arg6[%c0_17, %c0_18], %34 {strides = array<i32>} : memref<8x128xf32, #tpu.memory_space<vmem>>, vector<8x128xf32>,
    return
  }
  func.func @transform_0(%arg0: i32) -> (i32, i32) {
    %c0_i32 = arith.constant 0 : i32
    %c0_i32_0 = arith.constant 0 : i32
    %c0_i32_1 = arith.constant 0 : i32
    return %c0_i32, %c0_i32_0 : i32, i32
  }
  func.func @transform_1(%arg0: i32) -> (i32, i32) {
    %c0_i32 = arith.constant 0 : i32
    %c0_i32_0 = arith.constant 0 : i32
    %c0_i32_1 = arith.constant 0 : i32
    return %c0_i32, %c0_i32_0 : i32, i32
  }
  func.func @transform_2(%arg0: i32) -> (i32, i32) {
    %c0_i32 = arith.constant 0 : i32
    %c0_i32_0 = arith.constant 0 : i32
    %c0_i32_1 = arith.constant 0 : i32
    return %c0_i32, %c0_i32_0 : i32, i32
  }
  func.func @transform_3(%arg0: i32) -> (i32, i32) {
    %c0_i32 = arith.constant 0 : i32
    %c0_i32_0 = arith.constant 0 : i32
    %c0_i32_1 = arith.constant 0 : i32
    return %c0_i32, %c0_i32_0 : i32, i32
  }
  func.func @transform_4(%arg0: i32) -> (i32, i32) {
    %c0_i32 = arith.constant 0 : i32
    %c0_i32_0 = arith.constant 0 : i32
    %c0_i32_1 = arith.constant 0 : i32
    return %c0_i32, %c0_i32_0 : i32, i32
  }
  func.func @transform_5(%arg0: i32) -> (i32, i32) {
    %c0_i32 = arith.constant 0 : i32
    %c0_i32_0 = arith.constant 0 : i32
    %c0_i32_1 = arith.constant 0 : i32
    return %c0_i32, %c0_i32_0 : i32, i32
  }
}

</mosaic_0001>

<bundles_post_ra>
// kernel: tpu_custom_call.1
= control target key start
LH: loop header
LB: loop body
LE: loop exit
PB: predicated region body
PF: predicated region fallthrough
CT: control target
= control target key end

     0   :  { %10 = vsyncpa [#allocation3], 0  ;;  %s413_s0 = inlined_call_operand.hbm [shape: f32[8,64], index: 0, kind: input, shape index: {}]   ;;  %s414_s1 = inlined_call_operand.hbm [shape: f32[64,128], index: 1, kind: input, shape index: {}]   ;;  %s415_s2 = inlined_call_operand.vmem [shape: f32[1,128], index: 2, kind: input, shape index: {}]   ;;  %s416_s3 = inlined_call_operand.vmem [shape: f32[1,128], index: 3, kind: input, shape index: {}]   ;;  %s417_s4 = inlined_call_operand.vmem [shape: f32[1,128], index: 4, kind: input, shape index: {}]   ;;  %s418_s5 = inlined_call_operand.hbm [shape: f32[8,128], index: 5, kind: output, shape index: {}]  }
   0x1   :  { %11 = vsyncpa [#allocation6], 0 }
   0x2   :  { %12 = vsyncpa [#allocation4], 0  ;;  %s322_s18 = smov [#allocation2]   ;;  %s323_s20 = smov [#allocation5]  }
   0x3   :  { %s19_s19 = sshll.u32 %s322_s18, 4  ;;  %s28_s21 = sshll.u32 %s323_s20, 4  ;;  %s20_s19 = int_to_ptr.vmem [resolvable:$true] %s19_s19  ;;  %s361_s21 = int_to_ptr.vmem [resolvable:$true] %s28_s21 }
   0x4   :  { %s250_s24 = scalar_lea.hbm %s413_s0, 128 }
   0x5   :  { %p251_p0 = scmp.ne.s32.totalorder %s413_s0, %s250_s24  ;;  %p254_p1 = scmp.lt.u32.totalorder %s250_s24, %s413_s0 }
   0x7   :  { %p256_p2 = pnand %p254_p1, %p251_p0 }
   0x9   :  { %259 = shalt.err (!%p256_p2)
}
   0xa   :  { %s260_s29 = scalar_lea.vmem %s20_s19, 128  ;;  %p265_p4 = scmp.lt.s32.totalorder %s20_s19, %s20_s19 }
   0xb   :  { %p261_p3 = scmp.ne.s32.totalorder %s20_s19, %s260_s29  ;;  %p266_p5 = scmp.lt.s32.totalorder %s260_s29, %s260_s29 }
   0xd   :  { %p267_p6 = por %p266_p5, %p265_p4 }
   0xf   :  { %p268_p7 = pnand %p267_p6, %p261_p3 }
  0x11   :  { %271 = shalt.err (!%p268_p7)
}
  0x12   :  { %22 = dma.hbm_to_vmem [thread:$0]  %s413_s0, 128, %s20_s19, [#allocation3]  }
  0x13   :  { %s272_s9 = scalar_lea.hbm %s414_s1, 1024 }
  0x14   :  { %p273_p8 = scmp.ne.s32.totalorder %s414_s1, %s272_s9  ;;  %p276_p9 = scmp.lt.u32.totalorder %s272_s9, %s414_s1 }
  0x16   :  { %p278_p10 = pnand %p276_p9, %p273_p8 }
  0x18   :  { %281 = shalt.err (!%p278_p10)
}
  0x19   :  { %s282_s14 = scalar_lea.vmem %s361_s21, 1024  ;;  %p287_p12 = scmp.lt.s32.totalorder %s361_s21, %s361_s21 }
  0x1a   :  { %p283_p11 = scmp.ne.s32.totalorder %s361_s21, %s282_s14  ;;  %p288_p13 = scmp.lt.s32.totalorder %s282_s14, %s282_s14 }
  0x1c   :  { %p289_p0 = por %p288_p13, %p287_p12 }
  0x1e   :  { %p290_p1 = pnand %p289_p0, %p283_p11 }
  0x20   :  { %293 = shalt.err (!%p290_p1)
}
  0x21   :  { %s324_s0 = smov 128   ;;  %s325_s15 = smov 8  }
  0x22   :  { %34 = dma.hbm_to_vmem [thread:$0]  %s414_s1, 1024, %s361_s21, [#allocation6], %s324_s0, %s324_s0, %s325_s15  }
  0x23   :  { %316 = dma.done.wait [#allocation3], 128  }
  0x24   :  { %317 = vsyncadd [#allocation3], 4294967168 }
  0x25   :  { %318 = dma.done.wait [#allocation6], 1024  }
  0x26   :  { %319 = vsyncadd [#allocation6], 4294966272  ;;  %v326_v0 = vmov 0.0|0.0   ;;  %vm327_vm0 = vmmov 0   ;;  %v328_v1 = vmov 0.0   ;;  %v48_v2 = vld [vmem:[#allocation5] sm:$0xff]  ;;  %v152_v35 = vlaneseq }
  0x27   :  { %225 = vmatprep.subr.bf16.mxu0 %v326_v0  ;;  %222 = vmatprep.mubr.msk.f32.mxu0 %vm327_vm0, %v328_v1  ;;  %v49_v3 = vld [vmem:[#allocation5 + $0x8] sm:$0xff]  ;;  %v50_v4 = vld [vmem:[#allocation5 + $0x10] sm:$0xff]  ;;  %v51_v6 = vld [vmem:[#allocation5 + $0x18] sm:$0xff]  ;;  %vm56_vm1 = vcmask 523264   ;;  %v329_v48 = vmov 0  }
  0x28   :  { %v226_v5 = vpack.c.bf16 %v49_v3, %v48_v2  ;;  %v229_v7 = vpack.c.bf16 %v51_v6, %v50_v4  ;;  %v52_v8 = vld [vmem:[#allocation5 + $0x20] sm:$0xff]  ;;  %v53_v9 = vld [vmem:[#allocation5 + $0x28] sm:$0xff]  ;;  %v54_v11 = vld [vmem:[#allocation5 + $0x30] sm:$0xff]  ;;  %v153_v36 = vshrl.u32 %v152_v35, 7 }
  0x29   :  { %v232_v10 = vpack.c.bf16 %v53_v9, %v52_v8  ;;  %v55_v12 = vld [vmem:[#allocation5 + $0x38] sm:$0xff] }
  0x2a   :  { %227 = vmatpush3.bf16.msra.mxu0 %v226_v5  ;;  %v235_v13 = vpack.c.bf16 %v55_v12, %v54_v11  ;;  %v47_v14 = vld [vmem:[#allocation2] sm:$0xff]  ;;  %v154_v38 = vsub.s32 0, %v153_v36 }
  0x2b   :  { %228 = vmatprep.subr.bf16.mxu0 %v326_v0  ;;  %v147_v37 = vld [vmem:[%s416_s3] sm:$0x1]  ;;  %s330_s3 = smov [#allocation7]  }
  0x2c   :  { %v196_v42 = vld [vmem:[%s417_s4] ss:$0 sm:$0xff]  ;;  %s185_s23 = sshll.u32 %s330_s3, 4  ;;  %s186_s23 = int_to_ptr.vmem [resolvable:$true] %s185_s23 }
  0x2d   :  { %v166_v45 = vld [vmem:[%s415_s2] sm:$0x1]  ;;  %s294_s4 = scalar_lea.vmem %s186_s23, 128  ;;  %p299_p3 = scmp.lt.s32.totalorder %s186_s23, %s186_s23 }
  0x2e   :  { %230 = vmatpush3.bf16.msra.mxu0 %v229_v7  ;;  %vm167_vm2 = vcmp.gt.f32.partialorder %v166_v45, 0.0  ;;  %p295_p2 = scmp.ne.s32.totalorder %s186_s23, %s294_s4  ;;  %p300_p4 = scmp.lt.s32.totalorder %s294_s4, %s294_s4 }
  0x2f   :  { %231 = vmatprep.subr.bf16.mxu0 %v326_v0  ;;  %v171_v49 = vsel %vm167_vm2, 1, %v329_v48 }
  0x30   :  { %v175_v50 = vrot.slane %v171_v49, %v154_v38  ;;  %p301_p5 = por %p300_p4, %p299_p3 }
  0x32   :  { %233 = vmatpush3.bf16.msra.mxu0 %v232_v10  ;;  %vm176_vm3 = vcmp.eq.s32.totalorder %v175_v50, 1  ;;  %p302_p6 = pnand %p301_p5, %p295_p2 }
  0x33   :  { %234 = vmatprep.subr.bf16.mxu0 %v326_v0 }
  0x36   :  { %236 = vmatpush3.bf16.msra.mxu0 %v235_v13 }
  0x39   :  { %223 = vmatmul.mubr.msk.f32.vlgmr.msra.gmra.mrb[0].mxu0 %vm56_vm1, %v47_v14 }
 0x10c   :  { %v126_v15 = vpop.f32.mrb[0].mxu0 }
 0x10d   :  { %v130_v16 = vrot.slane %v126_v15, 4  ;;  %v224_v17 = vpop.f32.mrb[1].mxu0 }
 0x10f   :  { %v131_v18 = vadd.f32 %v130_v16, %v126_v15 }
 0x111   :  { %v132_v19 = vrot.slane %v131_v18, 2 }
 0x113   :  { %v133_v20 = vadd.f32 %v132_v19, %v131_v18 }
 0x115   :  { %v134_v21 = vrot.slane %v133_v20, 1 }
 0x117   :  { %v135_v22 = vadd.f32 %v134_v21, %v133_v20 }
 0x119   :  { %v136_v23 = vmul.f32 0.125, %v135_v22 }
 0x11b   :  { %v137_v24 = vsub.f32 %v126_v15, %v136_v23 }
 0x11d   :  { %v138_v25 = vmul.f32 %v137_v24, %v137_v24 }
 0x11f   :  { %v139_v26 = vrot.slane %v138_v25, 4 }
 0x121   :  { %v140_v27 = vadd.f32 %v139_v26, %v138_v25 }
 0x123   :  { %v141_v28 = vrot.slane %v140_v27, 2 }
 0x125   :  { %v142_v29 = vadd.f32 %v141_v28, %v140_v27 }
 0x127   :  { %v143_v30 = vrot.slane %v142_v29, 1 }
 0x129   :  { %v144_v31 = vadd.f32 %v143_v30, %v142_v29 }
 0x12b   :  { %v145_v32 = vmul.f32 0.125, %v144_v31 }
 0x12d   :  { %v146_v33 = vmax.f32 %v145_v32, 0.0 }
 0x12f   :  { %v148_v34 = vadd.f32 1e-05, %v146_v33 }
 0x131   :  { %246 = vrsqrt.f32 %v148_v34 }
 0x13b   :  { %v247_v39 = vpop.eup %246 }
 0x13c   :  { %v150_v40 = vmul.f32 %v247_v39, %v147_v37 }
 0x13e   :  { %v155_v41 = vrot.slane %v150_v40, %v154_v38 }
 0x140   :  { %v157_v43 = vmul.f32 %v155_v41, %v137_v24 }
 0x142   :  { %v165_v44 = vadd.f32 %v196_v42, %v157_v43 }
 0x144   :  { %v168_v46 = vmul.f32 0.5, %v165_v44 }
 0x146   :  { %v169_v47 = vmul.f32 1.442695, %v168_v46 }
 0x148   :  { %248 = vpow2.f32 %v169_v47 }
 0x152   :  { %v249_v51 = vpop.eup %248 }
 0x153   :  { %v177_v52 = vsel %vm176_vm3, %v249_v51, %v165_v44 }
 0x154   :  { %178 = vst [vmem:[#allocation7] sm:$0xff] %v177_v52 }
 0x155   :  { %305 = shalt.err (!%p302_p6)
}
 0x156   :  { %s306_s25 = scalar_lea.hbm %s418_s5, 128 }
 0x157   :  { %p307_p7 = scmp.ne.s32.totalorder %s418_s5, %s306_s25  ;;  %p310_p8 = scmp.lt.u32.totalorder %s306_s25, %s418_s5 }
 0x159   :  { %p312_p9 = pnand %p310_p8, %p307_p7 }
 0x15b   :  { %315 = shalt.err (!%p312_p9)
}
 0x15c   :  { %188 = dma.vmem_to_hbm [thread:$0]  %s186_s23, 128, %s418_s5, [#allocation4]  }
 0x15d   :  { %320 = dma.done.wait [#allocation4], 128  }
 0x15e   :  { %321 = vsyncadd [#allocation4], 4294967168 }
 0x15f   :  { %192 = vsyncpa [#allocation3], 1 }
 0x160   :  { %193 = vsyncpa [#allocation6], 1 }
 0x161   :  { %194 = vsyncpa [#allocation4], 1 }

</bundles_post_ra>
